<compile_context>
chip_gen: v7x
topology: tpu7x:2x2x1
jax: 0.10.0
libtpu: 0.0.40
codegen_flags: <defaults>
</compile_context>

<pallas_src>
import functools

import jax
import jax.numpy as jnp
from jax.experimental import pallas as pl
from jax.experimental.pallas import tpu as pltpu


def _resize_conv_kernel(x_ref, a_ref, sw_ref, b_ref, o_ref, *, K):
    """One batch item per grid step.

    x_ref : (1, C_in*H0p, W0p)        padded original-res input, rows (c_in, y), bf16
    a_ref : (C_out*H_out, K*C_in*H0p) folded conv weights, cols (dx, c_in, y), bf16
    sw_ref: (K, W0p, W_out)           0/1 column-gather (W upsample+pad+dx shift), bf16
    b_ref : (C_out*H_out, 1)          bias per output row, f32
    o_ref : (1, C_out*H_out, W_out)   output slab (reshaped to NCHW in the wrapper)
    """
    xl = x_ref[0]                                               # (C_in*H0p, W0p) bf16

    # W-direction nearest upsample + pad + dx tap shift as K small MXU gathers.
    # Exact: each gather column selects exactly one bf16 input value.
    gathered = [
        jnp.dot(xl, sw_ref[dx], preferred_element_type=jnp.float32)
           .astype(jnp.bfloat16)
        for dx in range(K)
    ]
    rhs = jnp.concatenate(gathered, axis=0)                     # (K*C_in*H0p, W_out) bf16

    # Single deep-contraction weight matmul (H-direction upsample/pad/dy folded in a_ref).
    acc = jnp.dot(a_ref[...], rhs,
                  preferred_element_type=jnp.float32)           # (C_out*H_out, W_out) f32

    o_ref[0] = (acc + b_ref[...]).astype(o_ref.dtype)


def resize_conv2d(x_nchw, weight_oihw, bias, *, scale_factor, padding=1):
    """Forward pass of ResizeConv2d. x_nchw: [N, C_in, H0, W0] float32, NCHW in/out."""
    # TODO(synk): only mode='nearest' with an integer scale_factor is implemented
    # (matches the module's default); other F.interpolate modes are not translated.
    N, C_in, H0, W0 = x_nchw.shape
    C_out, C_in_w, K, K2 = weight_oihw.shape
    assert C_in_w == C_in and K == K2
    s = int(scale_factor)
    p = int(padding)

    H, W = H0 * s, W0 * s                       # upsampled size
    H_out = H + 2 * p - K + 1                   # conv output size (stride 1)
    W_out = W + 2 * p - K + 1

    # Original-resolution zero pads so every (t+dy-p)//s source row / (x+dx-p)//s source
    # column lands inside the padded array (pad region holds the conv's zero padding).
    ph_lo = max(0, -((0 - p) // s))
    ph_hi = max(0, (H_out - 1 + (K - 1) - p) // s - (H0 - 1))
    pw_lo = max(0, -((0 - p) // s))
    pw_hi = max(0, (W_out - 1 + (K - 1) - p) // s - (W0 - 1))
    H0p = H0 + ph_lo + ph_hi
    W0p = W0 + pw_lo + pw_hi

    # Round H0p up so C_in*H0p is a multiple of 16 (bf16 sublane pack): the in-kernel
    # sublane concat of the K gathered blocks then lands on aligned offsets.  The extra
    # rows are zero and never selected by the tables, so they are weight-0 in a_tab.
    while (H0p * C_in) % 16 != 0:
        H0p += 1
        ph_hi += 1

    win_rows = C_in * H0p          # rows of the per-image input slab, (c_in, y)-major
    CT = C_out * H_out             # rows of the output slab, (c_out, t)-major

    # ---- constant tables (built once in the wrapper, bf16 for the MXU) ----
    # H direction: fold nearest upsample / pad / dy tap shift into the weights.
    dy = jnp.arange(K, dtype=jnp.int32)[:, None]
    yy_of = (jnp.arange(H_out, dtype=jnp.int32)[None, :] + dy - p) // s + ph_lo   # (K, H_out)
    sh = (yy_of[:, :, None] == jnp.arange(H0p, dtype=jnp.int32)).astype(jnp.float32)
    w_f32 = weight_oihw.astype(jnp.float32)                                       # (o,i,dy,dx)
    a5 = jnp.einsum('oiab,aty->otbiy', w_f32, sh)          # (C_out, H_out, K, C_in, H0p)
    a_tab = a5.reshape(CT, K * win_rows).astype(jnp.bfloat16)

    # W direction: 0/1 column-gather matrices (upsample + pad + dx shift), exact in bf16.
    dxi = jnp.arange(K, dtype=jnp.int32)[:, None]
    xx_of = (jnp.arange(W_out, dtype=jnp.int32)[None, :] + dxi - p) // s + pw_lo  # (K, W_out)
    sw_tab = (jnp.arange(W0p, dtype=jnp.int32)[None, :, None]
              == xx_of[:, None, :]).astype(jnp.bfloat16)                          # (K, W0p, W_out)
    # TODO(synk): for production widths (W_out >~ 512) replace part of the gather matmuls
    # with pltpu.roll of the gathered result (sw[dx+s] is sw[dx] shifted by one column).

    b_tab = jnp.repeat(bias.astype(jnp.float32), H_out)[:, None]                  # (CT, 1)

    # ---- input prep: bf16 cast + original-res zero pad + contiguous (c_in, y) merge ----
    # No transpose: the reshape only merges adjacent dims -> no extra HBM round trip.
    xp = jnp.pad(x_nchw.astype(jnp.bfloat16),
                 ((0, 0), (0, 0), (ph_lo, ph_hi), (pw_lo, pw_hi)))                # [N,C,H0p,W0p]
    xr = xp.reshape(N, win_rows, W0p)

    kernel = functools.partial(_resize_conv_kernel, K=K)

    # TODO(synk): at production shapes on v7x, single-buffer the constant-index operands
    # (a_tab / sw_tab / b_tab) via pipeline_mode=pl.Buffered(1) and re-introduce output
    # row tiling if the per-image block no longer fits the 64 MiB VMEM; irrelevant here.
    out = pl.pallas_call(
        kernel,
        out_shape=jax.ShapeDtypeStruct((N, CT, W_out), x_nchw.dtype),
        grid_spec=pltpu.PrefetchScalarGridSpec(
            num_scalar_prefetch=0,
            grid=(N,),
            in_specs=[
                pl.BlockSpec((1, win_rows, W0p), lambda n: (n, 0, 0)),
                pl.BlockSpec((CT, K * win_rows), lambda n: (0, 0)),
                pl.BlockSpec((K, W0p, W_out), lambda n: (0, 0, 0)),
                pl.BlockSpec((CT, 1), lambda n: (0, 0)),
            ],
            out_specs=pl.BlockSpec((1, CT, W_out), lambda n: (n, 0, 0)),
        ),
        compiler_params=pltpu.CompilerParams(
            dimension_semantics=("parallel",),
            vmem_limit_bytes=32 * 1024 * 1024,
        ),
    )(xr, a_tab, sw_tab, b_tab)

    # Free contiguous split back to NCHW.
    return out.reshape(N, C_out, H_out, W_out)


def _reference(x_nchw, weight_oihw, bias, *, scale_factor, padding=1):
    """Pure-JAX f32 reference (nearest upsample + lax conv) for validation."""
    s = int(scale_factor)
    x_up = jnp.repeat(jnp.repeat(x_nchw, s, axis=2), s, axis=3)
    out = jax.lax.conv_general_dilated(
        x_up, weight_oihw,
        window_strides=(1, 1),
        padding=[(padding, padding), (padding, padding)],
        dimension_numbers=("NCHW", "OIHW", "NCHW"))
    return out + bias.reshape(1, -1, 1, 1)


if __name__ == "__main__":
    # Module hyper-params (synthetic, deterministic init — not a checkpoint load).
    in_channels, out_channels, kernel_size, scale_factor = 4, 8, 3, 2
    N, H0, W0 = 2, 16, 16

    key = jax.random.PRNGKey(0)
    kx, kw, kb = jax.random.split(key, 3)

    x = jax.random.normal(kx, (N, in_channels, H0, W0), dtype=jnp.float32)
    fan_in = in_channels * kernel_size * kernel_size
    weight = jax.random.normal(
        kw, (out_channels, in_channels, kernel_size, kernel_size), dtype=jnp.float32
    ) * (1.0 / fan_in) ** 0.5
    bias = jax.random.normal(kb, (out_channels,), dtype=jnp.float32) * 0.1

    out = resize_conv2d(x, weight, bias, scale_factor=scale_factor)
    out = jax.block_until_ready(out)

    ref = jax.block_until_ready(_reference(x, weight, bias, scale_factor=scale_factor))

    assert out.shape == (N, out_channels, H0 * scale_factor, W0 * scale_factor), out.shape
    # bf16 MXU operands with f32 accumulation: tolerance relaxed vs. the pure-f32 path
    # (observed error is ~1e-3; bound is comfortably under 2e-2).
    assert jnp.allclose(out, ref, rtol=2e-2, atol=2e-2), float(jnp.max(jnp.abs(out - ref)))

    print("KERNEL_OK")
</pallas_src>

<mosaic_0001>
module attributes {stable_mosaic.version = 11 : i64} {
  func.func @_resize_conv_kernel(%arg0: i32, %arg1: memref<1x80x18xbf16, #tpu.memory_space<vmem>>, %arg2: memref<256x240xbf16, #tpu.memory_space<vmem>>, %arg3: memref<3x18x32xbf16, #tpu.memory_space<vmem>>, %arg4: memref<256x1xf32, #tpu.memory_space<vmem>>, %arg5: memref<1x256x32xf32, #tpu.memory_space<vmem>>) attributes {dimension_semantics = [#tpu.dimension_semantics<parallel>], iteration_bounds = array<i64: 2>, scalar_prefetch = 0 : i64, scratch_operands = 0 : i64, tpu.core_type = #tpu.core_type<tc>, window_params = [{transform_indices = @transform_0, window_bounds = array<i64: 1, 80, 18>}, {pipeline_mode = #tpu.pipeline_mode<synchronous>, transform_indices = @transform_1, window_bounds = array<i64: 256, 240>}, {pipeline_mode = #tpu.pipeline_mode<synchronous>, transform_indices = @transform_2, window_bounds = array<i64: 3, 18, 32>}, {pipeline_mode = #tpu.pipeline_mode<synchronous>, transform_indices = @transform_3, window_bounds = array<i64: 256, 1>}, {transform_indices = @transform_4, window_bounds = array<i64: 1, 256, 32>}]} {
    %c0 = arith.constant 0 : index
    %c0_0 = arith.constant 0 : index
    %c0_1 = arith.constant 0 : index
    %0 = vector.load %arg1[%c0, %c0_0, %c0_1] : memref<1x80x18xbf16, #tpu.memory_space<vmem>>, vector<1x80x18xbf16>
    %1 = vector.shape_cast %0 : vector<1x80x18xbf16> to vector<80x18xbf16>
    %c0_2 = arith.constant 0 : index
    %c0_3 = arith.constant 0 : index
    %c0_4 = arith.constant 0 : index
    %2 = vector.load %arg3[%c0_2, %c0_3, %c0_4] : memref<3x18x32xbf16, #tpu.memory_space<vmem>>, vector<1x18x32xbf16>
    %3 = vector.shape_cast %2 : vector<1x18x32xbf16> to vector<18x32xbf16>
    %cst = arith.constant dense<0.000000e+00> : vector<80x32xf32>
    %4 = tpu.matmul %1, %3, %cst {dimension_numbers = #tpu.dot_dimension_numbers<[1], [0], [0], [1], [0, 0, 1, 1], [], []>} : vector<80x18xbf16>, vector<18x32xbf16>, vector<80x32xf32> -> vector<80x32xf32>
    %5 = arith.truncf %4 : vector<80x32xf32> to vector<80x32xbf16>
    %c1 = arith.constant 1 : index
    %c0_5 = arith.constant 0 : index
    %c0_6 = arith.constant 0 : index
    %6 = vector.load %arg3[%c1, %c0_5, %c0_6] : memref<3x18x32xbf16, #tpu.memory_space<vmem>>, vector<1x18x32xbf16>
    %7 = vector.shape_cast %6 : vector<1x18x32xbf16> to vector<18x32xbf16>
    %cst_7 = arith.constant dense<0.000000e+00> : vector<80x32xf32>
    %8 = tpu.matmul %1, %7, %cst_7 {dimension_numbers = #tpu.dot_dimension_numbers<[1], [0], [0], [1], [0, 0, 1, 1], [], []>} : vector<80x18xbf16>, vector<18x32xbf16>, vector<80x32xf32> -> vector<80x32xf32>
    %9 = arith.truncf %8 : vector<80x32xf32> to vector<80x32xbf16>
    %c2 = arith.constant 2 : index
    %c0_8 = arith.constant 0 : index
    %c0_9 = arith.constant 0 : index
    %10 = vector.load %arg3[%c2, %c0_8, %c0_9] : memref<3x18x32xbf16, #tpu.memory_space<vmem>>, vector<1x18x32xbf16>
    %11 = vector.shape_cast %10 : vector<1x18x32xbf16> to vector<18x32xbf16>
    %cst_10 = arith.constant dense<0.000000e+00> : vector<80x32xf32>
    %12 = tpu.matmul %1, %11, %cst_10 {dimension_numbers = #tpu.dot_dimension_numbers<[1], [0], [0], [1], [0, 0, 1, 1], [], []>} : vector<80x18xbf16>, vector<18x32xbf16>, vector<80x32xf32> -> vector<80x32xf32>
    %13 = arith.truncf %12 : vector<80x32xf32> to vector<80x32xbf16>
    %14 = tpu.concatenate %5, %9, %13 in 0 : vector<80x32xbf16>, vector<80x32xbf16>, vector<80x32xbf16> -> vector<240x32xbf16>
    %c0_11 = arith.constant 0 : index
    %c0_12 = arith.constant 0 : index
    %15 = vector.load %arg2[%c0_11, %c0_12] : memref<256x240xbf16, #tpu.memory_space<vmem>>, vector<256x240xbf16>
    %cst_13 = arith.constant dense<0.000000e+00> : vector<256x32xf32>
    %16 = tpu.matmul %15, %14, %cst_13 {dimension_numbers = #tpu.dot_dimension_numbers<[1], [0], [0], [1], [0, 0, 1, 1], [], []>} : vector<256x240xbf16>, vector<240x32xbf16>, vector<256x32xf32> -> vector<256x32xf32>
    %c0_14 = arith.constant 0 : index
    %c0_15 = arith.constant 0 : index
    %17 = vector.load %arg4[%c0_14, %c0_15] : memref<256x1xf32, #tpu.memory_space<vmem>>, vector<256x1xf32>
    %18 = vector.broadcast %17 : vector<256x1xf32> to vector<256x32xf32>
    %19 = arith.addf %16, %18 : vector<256x32xf32>
    %c0_16 = arith.constant 0 : index
    %c0_17 = arith.constant 0 : index
    %c0_18 = arith.constant 0 : index
    %20 = vector.load %arg5[%c0_16, %c0_17, %c0_18] : memref<1x256x32xf32, #tpu.memory_space<vmem>>, vector<1x256x32xf32>
    %21 = vector.shape_cast %20 : vector<1x256x32xf32> to vector<256x32xf32>
    %22 = vector.shape_cast %19 : vector<256x32xf32> to vector<1x256x32xf32>
    tpu.vector_store %arg5[%c0_16, %c0_17, %c0_18], %22 {strides = array<i32>} : memref<1x256x32xf32, #tpu.memory_space<vmem>>, vector<1x256x32xf32>,
    return
  }
  func.func @transform_0(%arg0: i32) -> (i32, i32, i32) {
    %c0_i32 = arith.constant 0 : i32
    %c0_i32_0 = arith.constant 0 : i32
    %c0_i32_1 = arith.constant 0 : i32
    return %arg0, %c0_i32, %c0_i32_0 : i32, i32, i32
  }
  func.func @transform_1(%arg0: i32) -> (i32, i32) {
    %c0_i32 = arith.constant 0 : i32
    %c0_i32_0 = arith.constant 0 : i32
    %c0_i32_1 = arith.constant 0 : i32
    return %c0_i32, %c0_i32_0 : i32, i32
  }
  func.func @transform_2(%arg0: i32) -> (i32, i32, i32) {
    %c0_i32 = arith.constant 0 : i32
    %c0_i32_0 = arith.constant 0 : i32
    %c0_i32_1 = arith.constant 0 : i32
    %c0_i32_2 = arith.constant 0 : i32
    return %c0_i32, %c0_i32_0, %c0_i32_1 : i32, i32, i32
  }
  func.func @transform_3(%arg0: i32) -> (i32, i32) {
    %c0_i32 = arith.constant 0 : i32
    %c0_i32_0 = arith.constant 0 : i32
    %c0_i32_1 = arith.constant 0 : i32
    return %c0_i32, %c0_i32_0 : i32, i32
  }
  func.func @transform_4(%arg0: i32) -> (i32, i32, i32) {
    %c0_i32 = arith.constant 0 : i32
    %c0_i32_0 = arith.constant 0 : i32
    %c0_i32_1 = arith.constant 0 : i32
    return %arg0, %c0_i32, %c0_i32_0 : i32, i32, i32
  }
}

</mosaic_0001>

<bundles_post_ra>
// kernel: tpu_custom_call.1
= control target key start
LH: loop header
LB: loop body
LE: loop exit
PB: predicated region body
PF: predicated region fallthrough
CT: control target
= control target key end

     0   :  { %s1521_s15 = smov 0   ;;  %s1927_s0 = inlined_call_operand.vmem [shape: bf16[2,80,18], index: 0, kind: input, shape index: {}]   ;;  %s1928_s1 = inlined_call_operand.vmem [shape: bf16[256,240], index: 1, kind: input, shape index: {}]   ;;  %s1929_s2 = inlined_call_operand.vmem [shape: bf16[3,18,32], index: 2, kind: input, shape index: {}]   ;;  %s1930_s3 = inlined_call_operand.vmem [shape: f32[256,1], index: 3, kind: input, shape index: {}]   ;;  %s1931_s4 = inlined_call_operand.vmem [shape: f32[2,256,32], index: 4, kind: output, shape index: {}]  }
   0x1 LB: > { %s1198_s16 = sadd.s32 4294967295, %s1491_s15   ;;  %p1202_p0 = scmp.ge.s32.totalorder %s1491_s15, 1  ;;  %s1491_s15 = sphi %s1521_s15, %s14_s15  }
   0x2   : > { %p162_p1 = scmp.lt.s32.totalorder %s1491_s15, 3 }
   0x4   : > { %p163_p2 = pnand %p1202_p0, %p162_p1 }
   0x5   : > { %v1426_v0 = vld [vmem:[%s1929_s2] sm:$0xff] (!%p163_p2)   ;;  %v1493_v1 = vmov (!%p163_p2), 0.0   ;;  %v1427_v2 = vld [vmem:[%s1929_s2 + $0x8] ss:$0 sps:$4 sm:$0x11] (!%p163_p2)   ;;  %vm262_vm0 = vcmask (!%p163_p2), 1040384  }
   0x6   : > { %166 = sbr.rel (%p163_p2) target bundleno = 606 (0x25e), region = 36  ;;  %1310 = vmatprep.subr.bf16.mxu0 (!%p163_p2), %v1493_v1  ;;  %1334 = vmatprep.subr.bf16.mxu1 (!%p163_p2), %v1493_v1  ;;  %p188_p3 = scmp.lt.s32.totalorder (!%p163_p2), %s1198_s16, 1  ;;  %v264_v3 = vsel (!%p163_p2), %vm262_vm0, %v1427_v2, 0  ;;  %vm1494_vm1 = vmmov (!%p163_p2), 0   ;;  %v1431_v4 = vld [vmem:[%s1929_s2 + $0xc] sm:$0xff] (!%p163_p2)   ;;  %v1429_v6 = vld [vmem:[%s1929_s2 + $0x18] sm:$0xff] (!%p163_p2)  }
   0x7   : > { %1311 = vmatpush3.bf16.msra.mxu0 (!%p163_p2), %v1426_v0  ;;  %1314 = vmatprep.mubr.msk.bf16.mxu0 (!%p163_p2), %vm1494_vm1, %v1493_v1  ;;  %v1432_v5 = vld [vmem:[%s1929_s2 + $0x14] ss:$0 sps:$4 sm:$0x11] (!%p163_p2)   ;;  %v1434_v8 = vld [vmem:[%s1929_s2 + $0x20] ss:$0 sps:$4 sm:$0x11] (!%p163_p2)  }
   0x8   : > { %1312 = vmatprep.subr.bf16.mxu0 (!%p163_p2), %v1493_v1  ;;  %1338 = vmatprep.mubr.msk.bf16.mxu1 (!%p163_p2), %vm1494_vm1, %v1493_v1  ;;  %v358_v7 = vsel (!%p163_p2), %vm262_vm0, %v1432_v5, 0  ;;  %vm246_vm2 = vcmask (!%p163_p2), 146432   ;;  %v452_v11 = vsel (!%p163_p2), %vm262_vm0, %v1434_v8, 0  ;;  %v1495_v15 = vmov (!%p163_p2), 0   ;;  %v1439_v16 = vld [vmem:[%s1928_s1 + $0x4] ss:$8 sps:$4 sm:$0xff] (!%p163_p2)  }
   0x9   : > { %1335 = vmatpush3.bf16.msra.mxu1 (!%p163_p2), %v1431_v4  ;;  %1425 = vset.pattern.permute.xlu1 (!%p163_p2), %v1495_v15  ;;  %vm900_vm3 = vcmask (!%p163_p2), 916480   ;;  %v1442_v17 = vld [vmem:[%s1928_s1 + $0x54] ss:$8 sps:$4 sm:$0xff] (!%p163_p2)   ;;  %v564_v19 = vld [vmem:[%s1930_s3] sm:$0xff] (!%p163_p2)  ;;  %v565_v22 = vld [vmem:[%s1930_s3 + $0x8] sm:$0xff] (!%p163_p2)  ;;  %vm1110_vm4 = vcmask (!%p163_p2), 261120  }
   0xa   : > { %1336 = vmatprep.subr.bf16.mxu1 (!%p163_p2), %v1493_v1  ;;  %1424 = vset.pattern.permute.xlu0 (!%p163_p2), %v1495_v15  ;;  %v566_v18 = vld [vmem:[%s1930_s3 + $0x10] sm:$0xff] (!%p163_p2)  ;;  %v567_v21 = vld [vmem:[%s1930_s3 + $0x18] sm:$0xff] (!%p163_p2)  ;;  %v569_v30 = vld [vmem:[%s1930_s3 + $0x28] sm:$0xff] (!%p163_p2) }
   0xb   : > { %1313 = vmatpush3.bf16.msra.mxu0 (!%p163_p2), %v264_v3  ;;  %608 = vperm.xlu1 (!%p163_p2), %1425, %v566_v18   ;;  %v568_v31 = vld [vmem:[%s1930_s3 + $0x20] sm:$0xff] (!%p163_p2)  ;;  %v571_v35 = vld [vmem:[%s1930_s3 + $0x38] sm:$0xff] (!%p163_p2)  ;;  %v570_v36 = vld [vmem:[%s1930_s3 + $0x30] sm:$0xff] (!%p163_p2) }
   0xc   : > { %1358 = vmatprep.subr.bf16.mxu0 (!%p163_p2), %v1493_v1  ;;  %598 = vperm.xlu0 (!%p163_p2), %1424, %v564_v19   ;;  %v573_v44 = vld [vmem:[%s1930_s3 + $0x48] sm:$0xff] (!%p163_p2)  ;;  %v572_v45 = vld [vmem:[%s1930_s3 + $0x40] sm:$0xff] (!%p163_p2)  ;;  %v575_v49 = vld [vmem:[%s1930_s3 + $0x58] sm:$0xff] (!%p163_p2) }
   0xd   : > { %s1933_s16 = smov (!%p188_p3, %s1198_s16), 1  ;;  %1337 = vmatpush3.bf16.msra.mxu1 %v358_v7  ;;  %v574_v50 = vld [vmem:[%s1930_s3 + $0x50] sm:$0xff]  ;;  %v577_v58 = vld [vmem:[%s1930_s3 + $0x68] sm:$0xff]  ;;  %v576_v59 = vld [vmem:[%s1930_s3 + $0x60] sm:$0xff] }
   0xe   : > { %s1412_s25 = smul.u32 40, %s1933_s16  ;;  %1382 = vmatprep.subr.bf16.mxu1 %v1495_v15  ;;  %v579_v63 = vld [vmem:[%s1930_s3 + $0x78] sm:$0xff]  ;;  %v578_v0 = vld [vmem:[%s1930_s3 + $0x70] sm:$0xff]  ;;  %v581_v8 = vld [vmem:[%s1930_s3 + $0x88] sm:$0xff]  ;;  %s1288_s17 = sshll.u32 %s1933_s16, 8 }
   0xf   : > { %613 = vperm.xlu1 %1425, %v567_v21   ;;  %s1854_s20 = scalar_lea.vmem %s1931_s4, %s1288_s17 }
  0x10   : > { %s192_s6 = scalar_lea.vmem %s1927_s0, %s1412_s25  ;;  %603 = vperm.xlu0 %1424, %v565_v22  }
  0x11   : > { %v1428_v9 = vld [vmem:[%s192_s6] sm:$0xff]   ;;  %v1430_v10 = vld [vmem:[%s192_s6 + $0x8] sm:$0xff]   ;;  %v1433_v12 = vld [vmem:[%s192_s6 + $0x10] sm:$0xff]  }
  0x12   : > { %1315 = vmatmul.mubr.msk.bf16.vlgmr.msra.gmra.mrb[0].mxu0 %vm246_vm2, %v1428_v9  ;;  %1339 = vmatmul.mubr.msk.bf16.vlgmr.msra.gmra.mrb[0].mxu1 %vm246_vm2, %v1428_v9  ;;  %v1435_v13 = vld [vmem:[%s192_s6 + $0x18] sm:$0xff]   ;;  %v1436_v14 = vld [vmem:[%s192_s6 + $0x20] sm:$0xff]  }
  0x13   : > { %1359 = vmatpush3.bf16.msra.mxu0 %v1429_v6  ;;  %1318 = vmatprep.mubr.msk.bf16.mxu0 %vm1494_vm1, %v1493_v1 }
  0x14   : > { %1360 = vmatprep.subr.bf16.mxu0 %v1493_v1  ;;  %1342 = vmatprep.mubr.msk.bf16.mxu1 %vm1494_vm1, %v1493_v1 }
  0x15   : > { %623 = vperm.xlu1 %1425, %v569_v30   ;;  %618 = vperm.xlu0 %1424, %v568_v31  }
  0x17   : > { %1361 = vmatpush3.bf16.msra.mxu0 %v452_v11 }
  0x18   : > { %949 = vmatprep.subr.bf16.mxu0 %v1495_v15 }
  0x19   : > { %633 = vperm.xlu1 %1425, %v571_v35   ;;  %628 = vperm.xlu0 %1424, %v570_v36   ;;  %v589_v35 = vld [vmem:[%s1930_s3 + $0xc8] sm:$0xff]  ;;  %v588_v36 = vld [vmem:[%s1930_s3 + $0xc0] sm:$0xff] }
  0x1a   : > { %1319 = vmatmul.mubr.msk.bf16.gmra.mrb[4].mxu0 %vm246_vm2, %v1430_v10  ;;  %1343 = vmatmul.mubr.msk.bf16.gmra.mrb[4].mxu1 %vm246_vm2, %v1430_v10 }
  0x1b   : > { %1322 = vmatprep.mubr.msk.bf16.mxu0 %vm1494_vm1, %v1493_v1  ;;  %1346 = vmatprep.mubr.msk.bf16.mxu1 %vm1494_vm1, %v1493_v1 }
  0x1d   : > { %643 = vperm.xlu1 %1425, %v573_v44   ;;  %638 = vperm.xlu0 %1424, %v572_v45   ;;  %v592_v44 = vld [vmem:[%s1930_s3 + $0xe0] sm:$0xff] }
  0x21   : > { %653 = vperm.xlu1 %1425, %v575_v49   ;;  %648 = vperm.xlu0 %1424, %v574_v50  }
  0x22   : > { %1323 = vmatmul.mubr.msk.bf16.gmra.mrb[8].mxu0 %vm246_vm2, %v1433_v12  ;;  %1347 = vmatmul.mubr.msk.bf16.gmra.mrb[8].mxu1 %vm246_vm2, %v1433_v12 }
  0x23   : > { %1326 = vmatprep.mubr.msk.bf16.mxu0 %vm1494_vm1, %v1493_v1  ;;  %1350 = vmatprep.mubr.msk.bf16.mxu1 %vm1494_vm1, %v1493_v1 }
  0x25   : > { %663 = vperm.xlu1 %1425, %v577_v58   ;;  %658 = vperm.xlu0 %1424, %v576_v59  }
  0x29   : > { %673 = vperm.xlu1 %1425, %v579_v63   ;;  %668 = vperm.xlu0 %1424, %v578_v0   ;;  %v1440_v63 = vld [vmem:[%s1928_s1 + $0x50] ss:$8 sps:$4 sm:$0xff]   ;;  %v1443_v0 = vld [vmem:[%s1928_s1 + $0x14] ss:$8 sps:$4 sm:$0xff]  }
  0x2a   : > { %1327 = vmatmul.mubr.msk.bf16.gmra.mrb[12].mxu0 %vm246_vm2, %v1435_v13  ;;  %1351 = vmatmul.mubr.msk.bf16.gmra.mrb[12].mxu1 %vm246_vm2, %v1435_v13 }
  0x2b   : > { %1330 = vmatprep.mubr.msk.bf16.mxu0 %vm1494_vm1, %v1493_v1  ;;  %1354 = vmatprep.mubr.msk.bf16.mxu1 %vm1494_vm1, %v1493_v1 }
  0x2d   : > { %683 = vperm.xlu1 %1425, %v581_v8   ;;  %v1457_v8 = vld [vmem:[%s1928_s1 + $0x84] ss:$8 sps:$4 sm:$0xff]  }
  0x32   : > { %1331 = vmatmul.mubr.msk.bf16.gmra.mrb[16].mxu0 %vm246_vm2, %v1436_v14  ;;  %1355 = vmatmul.mubr.msk.bf16.gmra.mrb[16].mxu1 %vm246_vm2, %v1436_v14 }
  0x33   : > { %1362 = vmatprep.mubr.msk.bf16.mxu0 %vm1494_vm1, %v1493_v1  ;;  %1275 = vmatprep.mubr.msk.bf16.mxu1 %vm900_vm3, %v1442_v17 }
  0x3a   : > { %1363 = vmatmul.mubr.msk.bf16.vlgmr.msra.gmra.mrb[20].mxu0 %vm246_vm2, %v1428_v9  ;;  %v580_v9 = vld [vmem:[%s1930_s3 + $0x80] sm:$0xff] }
  0x3b   : > { %1366 = vmatprep.mubr.msk.bf16.mxu0 %vm1494_vm1, %v1493_v1  ;;  %678 = vperm.xlu0 %1424, %v580_v9   ;;  %v1459_v9 = vld [vmem:[%s1928_s1 + $0x30] ss:$8 sps:$4 sm:$0xff]  }
  0x42   : > { %1367 = vmatmul.mubr.msk.bf16.gmra.mrb[24].mxu0 %vm246_vm2, %v1430_v10 }
  0x43   : > { %1370 = vmatprep.mubr.msk.bf16.mxu0 %vm1494_vm1, %v1493_v1 }
  0x4a   : > { %1371 = vmatmul.mubr.msk.bf16.gmra.mrb[28].mxu0 %vm246_vm2, %v1433_v12 }
  0x4b   : > { %1374 = vmatprep.mubr.msk.bf16.mxu0 %vm1494_vm1, %v1493_v1 }
  0x52   : > { %1375 = vmatmul.mubr.msk.bf16.gmra.mrb[32].mxu0 %vm246_vm2, %v1435_v13  ;;  %v583_v13 = vld [vmem:[%s1930_s3 + $0x98] sm:$0xff] }
  0x53   : > { %1378 = vmatprep.mubr.msk.bf16.mxu0 %vm1494_vm1, %v1493_v1  ;;  %693 = vperm.xlu1 %1425, %v583_v13   ;;  %v1465_v13 = vld [vmem:[%s1928_s1 + $0x40] ss:$8 sps:$4 sm:$0xff]  }
  0x5a   : > { %1379 = vmatmul.mubr.msk.bf16.gmra.mrb[36].mxu0 %vm246_vm2, %v1436_v14  ;;  %v582_v14 = vld [vmem:[%s1930_s3 + $0x90] sm:$0xff] }
  0x5b   : > { %1270 = vmatprep.mubr.msk.bf16.mxu0 %vm900_vm3, %v1439_v16  ;;  %688 = vperm.xlu0 %1424, %v582_v14   ;;  %v1466_v14 = vld [vmem:[%s1928_s1 + $0x90] ss:$8 sps:$4 sm:$0xff]  }
  0xe5   : > { %v300_v20 = vpop.f32.mrb[0].mxu0  ;;  %v394_v25 = vpop.f32.mrb[0].mxu1 }
  0xe6   : > { %v1316_v23 = vpop.f32.mrb[1].mxu0  ;;  %v1340_v28 = vpop.f32.mrb[1].mxu1 }
  0xe7   : > { %v303_v24 = vpop.f32.mrb[2].mxu0  ;;  %v397_v29 = vpop.f32.mrb[2].mxu1  ;;  %v585_v23 = vld [vmem:[%s1930_s3 + $0xa8] sm:$0xff]  ;;  %v587_v28 = vld [vmem:[%s1930_s3 + $0xb8] sm:$0xff] }
  0xe8   : > { %v339_v26 = vpack.c.bf16 %v303_v24, %v300_v20  ;;  %v1317_v27 = vpop.f32.mrb[3].mxu0  ;;  %v1616_v32 = vpack.c.bf16 %v397_v29, %v394_v25  ;;  %v1341_v33 = vpop.f32.mrb[3].mxu1  ;;  %v584_v24 = vld [vmem:[%s1930_s3 + $0xa0] sm:$0xff]  ;;  %703 = vperm.xlu1 %1425, %v585_v23   ;;  %v586_v29 = vld [vmem:[%s1930_s3 + $0xb0] sm:$0xff] }
  0xe9   : > { %698 = vperm.xlu0 %1424, %v584_v24   ;;  %v1478_v23 = vld [vmem:[%s1928_s1 + $0xd0] ss:$8 sps:$4 sm:$0xff]   ;;  %v1479_v24 = vld [vmem:[%s1928_s1 + $0xe4] ss:$8 sps:$4 sm:$0xff]  }
  0xea   : > { %950 = vmatpush1.bf16.msra.mxu0 %v339_v26  ;;  %1397 = vmatpush1.bf16.msra.mxu1 %v339_v26 }
  0xeb   : > { %951 = vmatprep.subr.bf16.mxu0 %v1495_v15  ;;  %1383 = vmatprep.subr.bf16.mxu1 %v1495_v15 }
  0xec   : > { %713 = vperm.xlu1 %1425, %v587_v28   ;;  %v609_v28 = vpop.permute.xlu1 %608 }
  0xed   : > { %v308_v34 = vpop.f32.mrb[4].mxu0  ;;  %v402_v39 = vpop.f32.mrb[4].mxu1  ;;  %708 = vperm.xlu0 %1424, %v586_v29  }
  0xee   : > { %v1320_v37 = vpop.f32.mrb[5].mxu0  ;;  %v1344_v42 = vpop.f32.mrb[5].mxu1 }
  0xef   : > { %v311_v38 = vpop.f32.mrb[6].mxu0  ;;  %v405_v43 = vpop.f32.mrb[6].mxu1  ;;  %v591_v37 = vld [vmem:[%s1930_s3 + $0xd8] sm:$0xff] }
  0xf0   : > { %v340_v40 = vpack.c.bf16 %v311_v38, %v308_v34  ;;  %v1321_v41 = vpop.f32.mrb[7].mxu0  ;;  %v1632_v46 = vpack.c.bf16 %v405_v43, %v402_v39  ;;  %v1345_v47 = vpop.f32.mrb[7].mxu1  ;;  %723 = vperm.xlu1 %1425, %v589_v35   ;;  %v590_v38 = vld [vmem:[%s1930_s3 + $0xd0] sm:$0xff]  ;;  %v593_v43 = vld [vmem:[%s1930_s3 + $0xe8] sm:$0xff] }
  0xf1   : > { %718 = vperm.xlu0 %1424, %v588_v36   ;;  %v594_v47 = vld [vmem:[%s1930_s3 + $0xf0] sm:$0xff]  ;;  %v599_v29 = vpop.permute.xlu0 %598 }
  0xf2   : > { %952 = vmatpush1.bf16.msra.mxu0 %v340_v40  ;;  %1398 = vmatpush1.bf16.msra.mxu1 %v340_v40 }
  0xf3   : > { %953 = vmatprep.subr.bf16.mxu0 %v1495_v15  ;;  %1384 = vmatprep.subr.bf16.mxu1 %v1495_v15 }
  0xf4   : > { %733 = vperm.xlu1 %1425, %v591_v37  }
  0xf5   : > { %v316_v48 = vpop.f32.mrb[8].mxu0  ;;  %v410_v53 = vpop.f32.mrb[8].mxu1  ;;  %728 = vperm.xlu0 %1424, %v590_v38  }
  0xf6   : > { %v1324_v51 = vpop.f32.mrb[9].mxu0  ;;  %v1348_v56 = vpop.f32.mrb[9].mxu1 }
  0xf7   : > { %v319_v52 = vpop.f32.mrb[10].mxu0  ;;  %v413_v57 = vpop.f32.mrb[10].mxu1 }
  0xf8   : > { %v341_v54 = vpack.c.bf16 %v319_v52, %v316_v48  ;;  %v1325_v55 = vpop.f32.mrb[11].mxu0  ;;  %v1648_v60 = vpack.c.bf16 %v413_v57, %v410_v53  ;;  %v1349_v61 = vpop.f32.mrb[11].mxu1  ;;  %743 = vperm.xlu1 %1425, %v593_v43  }
  0xf9   : > { %738 = vperm.xlu0 %1424, %v592_v44  }
  0xfa   : > { %954 = vmatpush1.bf16.msra.mxu0 %v341_v54  ;;  %1399 = vmatpush1.bf16.msra.mxu1 %v341_v54 }
  0xfb   : > { %955 = vmatprep.subr.bf16.mxu0 %v1495_v15  ;;  %1385 = vmatprep.subr.bf16.mxu1 %v1495_v15 }
  0xfd   : > { %v324_v62 = vpop.f32.mrb[12].mxu0  ;;  %v418_v3 = vpop.f32.mrb[12].mxu1  ;;  %748 = vperm.xlu0 %1424, %v594_v47  }
  0xfe   : > { %v1328_v1 = vpop.f32.mrb[13].mxu0  ;;  %v1352_v6 = vpop.f32.mrb[13].mxu1 }
  0xff   : > { %v327_v2 = vpop.f32.mrb[14].mxu0  ;;  %v421_v7 = vpop.f32.mrb[14].mxu1  ;;  %v1447_v1 = vld [vmem:[%s1928_s1 + $0x10] ss:$8 sps:$4 sm:$0xff]  }
 0x100   : > { %v342_v4 = vpack.c.bf16 %v327_v2, %v324_v62  ;;  %v1329_v5 = vpop.f32.mrb[15].mxu0  ;;  %v1664_v10 = vpack.c.bf16 %v421_v7, %v418_v3  ;;  %v1353_v11 = vpop.f32.mrb[15].mxu1  ;;  %v1437_v62 = vld [vmem:[%s1928_s1] ss:$8 sps:$4 sm:$0xff]   ;;  %v1449_v3 = vld [vmem:[%s1928_s1 + $0x24] ss:$8 sps:$4 sm:$0xff]  }
 0x101   : > { %v1448_v2 = vld [vmem:[%s1928_s1 + $0x60] ss:$8 sps:$4 sm:$0xff]   ;;  %v1454_v6 = vld [vmem:[%s1928_s1 + $0x70] ss:$8 sps:$4 sm:$0xff]   ;;  %v1455_v7 = vld [vmem:[%s1928_s1 + $0x34] ss:$8 sps:$4 sm:$0xff]  }
 0x102   : > { %956 = vmatpush1.bf16.msra.mxu0 %v342_v4  ;;  %1400 = vmatpush1.bf16.msra.mxu1 %v342_v4  ;;  %v1451_v4 = vld [vmem:[%s1928_s1 + $0x74] ss:$8 sps:$4 sm:$0xff]   ;;  %v1453_v5 = vld [vmem:[%s1928_s1 + $0x20] ss:$8 sps:$4 sm:$0xff]   ;;  %v1461_v11 = vld [vmem:[%s1928_s1 + $0x44] ss:$8 sps:$4 sm:$0xff]  }
 0x103   : > { %957 = vmatprep.subr.bf16.mxu0 %v1495_v15  ;;  %1386 = vmatprep.subr.bf16.mxu1 %v1495_v15 }
 0x105   : > { %v332_v12 = vpop.f32.mrb[16].mxu0  ;;  %v426_v18 = vpop.f32.mrb[16].mxu1 }
 0x106   : > { %v1332_v16 = vpop.f32.mrb[17].mxu0  ;;  %v1356_v21 = vpop.f32.mrb[17].mxu1 }
 0x107   : > { %v335_v17 = vpop.f32.mrb[18].mxu0  ;;  %v429_v22 = vpop.f32.mrb[18].mxu1  ;;  %v1467_v16 = vld [vmem:[%s1928_s1 + $0xa4] ss:$8 sps:$4 sm:$0xff]   ;;  %v1475_v21 = vld [vmem:[%s1928_s1 + $0xc0] ss:$8 sps:$4 sm:$0xff]  }
 0x108   : > { %v343_v19 = vpack.c.bf16 %v335_v17, %v332_v12  ;;  %v1333_v20 = vpop.f32.mrb[19].mxu0  ;;  %v437_v25 = vpack.c.bf16 %v429_v22, %v426_v18  ;;  %v1357_v26 = vpop.f32.mrb[19].mxu1  ;;  %v1463_v12 = vld [vmem:[%s1928_s1 + $0x94] ss:$8 sps:$4 sm:$0xff]   ;;  %v1469_v17 = vld [vmem:[%s1928_s1 + $0xa0] ss:$8 sps:$4 sm:$0xff]  }
 0x109   : > { %v1470_v18 = vld [vmem:[%s1928_s1 + $0xb4] ss:$8 sps:$4 sm:$0xff]   ;;  %v1473_v20 = vld [vmem:[%s1928_s1 + $0xc4] ss:$8 sps:$4 sm:$0xff]  }
 0x10a   : > { %958 = vmatpush1.bf16.msra.mxu0 %v343_v19  ;;  %1401 = vmatpush1.bf16.msra.mxu1 %v343_v19  ;;  %v1472_v19 = vld [vmem:[%s1928_s1 + $0xb0] ss:$8 sps:$4 sm:$0xff]   ;;  %v1476_v22 = vld [vmem:[%s1928_s1 + $0xd4] ss:$8 sps:$4 sm:$0xff]  }
 0x10b   : > { %959 = vmatprep.subr.bf16.mxu0 %v1495_v15  ;;  %1387 = vmatprep.subr.bf16.mxu1 %v1495_v15  ;;  %v1482_v26 = vld [vmem:[%s1928_s1 + $0xf4] ss:$8 sps:$4 sm:$0xff]  }
 0x10d   : > { %v488_v27 = vpop.f32.mrb[20].mxu0 }
 0x10e   : > { %v1364_v30 = vpop.f32.mrb[21].mxu0  ;;  %960 = vmatpush1.bf16.msra.mxu0 %v1616_v32  ;;  %1402 = vmatpush1.bf16.msra.mxu1 %v1616_v32 }
 0x10f   : > { %v491_v31 = vpop.f32.mrb[22].mxu0  ;;  %961 = vmatprep.subr.bf16.mxu0 %v1495_v15  ;;  %1388 = vmatprep.subr.bf16.mxu1 %v1495_v15  ;;  %v614_v30 = vpop.permute.xlu1 %613 }
 0x110   : > { %v527_v33 = vpack.c.bf16 %v491_v31, %v488_v27  ;;  %v1365_v34 = vpop.f32.mrb[23].mxu0  ;;  %v1484_v27 = vld [vmem:[%s1928_s1 + $0xf0] ss:$8 sps:$4 sm:$0xff]   ;;  %v604_v31 = vpop.permute.xlu0 %603 }
 0x112   : > { %962 = vmatpush1.bf16.msra.mxu0 %v1632_v46  ;;  %1403 = vmatpush1.bf16.msra.mxu1 %v1632_v46  ;;  %v595_v46 = vld [vmem:[%s1930_s3 + $0xf8] sm:$0xff] }
 0x113   : > { %963 = vmatprep.subr.bf16.mxu0 %v1495_v15  ;;  %1389 = vmatprep.subr.bf16.mxu1 %v1495_v15 }
 0x114   : > { %753 = vperm.xlu1 %1425, %v595_v46   ;;  %v619_v34 = vpop.permute.xlu0 %618 }
 0x115   : > { %v496_v32 = vpop.f32.mrb[24].mxu0 }
 0x116   : > { %v1368_v39 = vpop.f32.mrb[25].mxu0  ;;  %964 = vmatpush1.bf16.msra.mxu0 %v1648_v60  ;;  %1404 = vmatpush1.bf16.msra.mxu1 %v1648_v60 }
 0x117   : > { %v499_v40 = vpop.f32.mrb[26].mxu0  ;;  %965 = vmatprep.subr.bf16.mxu0 %v1495_v15  ;;  %1390 = vmatprep.subr.bf16.mxu1 %v1495_v15 }
 0x118   : > { %v528_v41 = vpack.c.bf16 %v499_v40, %v496_v32  ;;  %v1369_v42 = vpop.f32.mrb[27].mxu0  ;;  %v1844_v36 = vpop.permute.xlu0 %628 }
 0x11a   : > { %966 = vmatpush1.bf16.msra.mxu0 %v1664_v10  ;;  %1405 = vmatpush1.bf16.msra.mxu1 %v1664_v10  ;;  %v1460_v10 = vld [vmem:[%s1928_s1 + $0x80] ss:$8 sps:$4 sm:$0xff]  }
 0x11b   : > { %967 = vmatprep.subr.bf16.mxu0 %v1495_v15  ;;  %1391 = vmatprep.subr.bf16.mxu1 %v1495_v15 }
 0x11c   : > { %v1848_v37 = vpop.permute.xlu0 %638 }
 0x11d   : > { %v504_v45 = vpop.f32.mrb[28].mxu0 }
 0x11e   : > { %v1372_v48 = vpop.f32.mrb[29].mxu0  ;;  %968 = vmatpush1.bf16.msra.mxu0 %v437_v25  ;;  %1406 = vmatpush1.bf16.msra.mxu1 %v437_v25  ;;  %v1481_v25 = vld [vmem:[%s1928_s1 + $0xe0] ss:$8 sps:$4 sm:$0xff]  }
 0x11f   : > { %v507_v49 = vpop.f32.mrb[30].mxu0  ;;  %969 = vmatprep.subr.bf16.mxu0 %v1495_v15  ;;  %1392 = vmatprep.subr.bf16.mxu1 %v1495_v15 }
 0x120   : > { %v529_v50 = vpack.c.bf16 %v507_v49, %v504_v45  ;;  %v1373_v51 = vpop.f32.mrb[31].mxu0  ;;  %v649_v39 = vpop.permute.xlu0 %648 }
 0x122   : > { %970 = vmatpush1.bf16.msra.mxu0 %v527_v33  ;;  %1407 = vmatpush1.bf16.msra.mxu1 %v527_v33  ;;  %v624_v33 = vpop.permute.xlu1 %623 }
 0x123   : > { %971 = vmatprep.subr.bf16.mxu0 %v1495_v15  ;;  %1393 = vmatprep.subr.bf16.mxu1 %v1495_v15 }
 0x125   : > { %v512_v52 = vpop.f32.mrb[32].mxu0 }
 0x126   : > { %v1376_v53 = vpop.f32.mrb[33].mxu0  ;;  %972 = vmatpush1.bf16.msra.mxu0 %v528_v41  ;;  %1408 = vmatpush1.bf16.msra.mxu1 %v528_v41  ;;  %v1842_v35 = vpop.permute.xlu1 %633 }
 0x127   : > { %v515_v54 = vpop.f32.mrb[34].mxu0  ;;  %973 = vmatprep.subr.bf16.mxu0 %v1495_v15  ;;  %1394 = vmatprep.subr.bf16.mxu1 %v1495_v15  ;;  %v659_v53 = vpop.permute.xlu0 %658 }
 0x128   : > { %v530_v55 = vpack.c.bf16 %v515_v54, %v512_v52  ;;  %v1377_v56 = vpop.f32.mrb[35].mxu0 }
 0x12a   : > { %974 = vmatpush1.bf16.msra.mxu0 %v529_v50  ;;  %1409 = vmatpush1.bf16.msra.mxu1 %v529_v50  ;;  %v1846_v32 = vpop.permute.xlu1 %643 }
 0x12b   : > { %975 = vmatprep.subr.bf16.mxu0 %v1495_v15  ;;  %1395 = vmatprep.subr.bf16.mxu1 %v1495_v15 }
 0x12d   : > { %v520_v57 = vpop.f32.mrb[36].mxu0 }
 0x12e   : > { %v1380_v58 = vpop.f32.mrb[37].mxu0  ;;  %976 = vmatpush1.bf16.msra.mxu0 %v530_v55  ;;  %1410 = vmatpush1.bf16.msra.mxu1 %v530_v55  ;;  %v654_v38 = vpop.permute.xlu1 %653 }
 0x12f   : > { %v523_v59 = vpop.f32.mrb[38].mxu0  ;;  %977 = vmatprep.subr.bf16.mxu0 %v1495_v15  ;;  %1396 = vmatprep.subr.bf16.mxu1 %v1495_v15  ;;  %v1445_v15 = vld [vmem:[%s1928_s1 + $0x64] ss:$8 sps:$4 sm:$0xff]  }
 0x130   : > { %v531_v60 = vpack.c.bf16 %v523_v59, %v520_v57  ;;  %v1381_v61 = vpop.f32.mrb[39].mxu0 }
 0x132   : > { %978 = vmatpush1.bf16.msra.mxu0 %v531_v60  ;;  %1411 = vmatpush1.bf16.msra.mxu1 %v531_v60  ;;  %v664_v52 = vpop.permute.xlu1 %663 }
 0x135   : > { %982 = vmatmul.mubr.bf16.vlgmr.msra.gmra.mrb[40].mxu0 %v1437_v62  ;;  %1022 = vmatmul.mubr.bf16.vlgmr.msra.gmra.mrb[20].mxu1 %v1440_v63 }
 0x136   : > { %1271 = vmatprep.mubr.msk.bf16.mxu0 %vm900_vm3, %v1443_v0  ;;  %1276 = vmatprep.mubr.msk.bf16.mxu1 %vm900_vm3, %v1445_v15 }
 0x13d   : > { %990 = vmatmul.mubr.bf16.gmra.mrb[44].mxu0 %v1447_v1  ;;  %1030 = vmatmul.mubr.bf16.gmra.mrb[24].mxu1 %v1448_v2  ;;  %v674_v1 = vpop.permute.xlu1 %673  ;;  %v669_v2 = vpop.permute.xlu0 %668 }
 0x13e   : > { %1272 = vmatprep.mubr.msk.bf16.mxu0 %vm900_vm3, %v1449_v3  ;;  %1277 = vmatprep.mubr.msk.bf16.mxu1 %vm900_vm3, %v1451_v4 }
 0x145   : > { %998 = vmatmul.mubr.bf16.gmra.mrb[48].mxu0 %v1453_v5  ;;  %1038 = vmatmul.mubr.bf16.gmra.mrb[28].mxu1 %v1454_v6 }
 0x146   : > { %1273 = vmatprep.mubr.msk.bf16.mxu0 %vm900_vm3, %v1455_v7  ;;  %1278 = vmatprep.mubr.msk.bf16.mxu1 %vm900_vm3, %v1457_v8 }
 0x14d   : > { %1006 = vmatmul.mubr.bf16.gmra.mrb[52].mxu0 %v1459_v9  ;;  %1046 = vmatmul.mubr.bf16.gmra.mrb[32].mxu1 %v1460_v10 }
 0x14e   : > { %1274 = vmatprep.mubr.msk.bf16.mxu0 %vm900_vm3, %v1461_v11  ;;  %1279 = vmatprep.mubr.msk.bf16.mxu1 %vm900_vm3, %v1463_v12 }
 0x155   : > { %1014 = vmatmul.mubr.bf16.gmra.mrb[56].mxu0 %v1465_v13  ;;  %1054 = vmatmul.mubr.bf16.gmra.mrb[36].mxu1 %v1466_v14 }
 0x156   : > { %1280 = vmatprep.mubr.msk.bf16.mxu1 %vm900_vm3, %v1467_v16  ;;  %v684_v16 = vpop.permute.xlu1 %683 }
 0x15d   : > { %1062 = vmatmul.mubr.bf16.gmra.mrb[40].mxu1 %v1469_v17  ;;  %v679_v17 = vpop.permute.xlu0 %678 }
 0x15e   : > { %1281 = vmatprep.mubr.msk.bf16.mxu1 %vm900_vm3, %v1470_v18 }
 0x165   : > { %1070 = vmatmul.mubr.bf16.gmra.mrb[44].mxu1 %v1472_v19 }
 0x166   : > { %1282 = vmatprep.mubr.msk.bf16.mxu1 %vm900_vm3, %v1473_v20 }
 0x16d   : > { %1078 = vmatmul.mubr.bf16.gmra.mrb[48].mxu1 %v1475_v21 }
 0x16e   : > { %1283 = vmatprep.mubr.msk.bf16.mxu1 %vm900_vm3, %v1476_v22 }
 0x175   : > { %1086 = vmatmul.mubr.bf16.gmra.mrb[52].mxu1 %v1478_v23 }
 0x176   : > { %1284 = vmatprep.mubr.msk.bf16.mxu1 %vm900_vm3, %v1479_v24 }
 0x17d   : > { %1094 = vmatmul.mubr.bf16.gmra.mrb[56].mxu1 %v1481_v25 }
 0x17e   : > { %1285 = vmatprep.mubr.msk.bf16.mxu1 %vm900_vm3, %v1482_v26 }
 0x185   : > { %1102 = vmatmul.mubr.bf16.gmra.mrb[60].mxu1 %v1484_v27 }
 0x208   : > { %v1023_v40 = vpop.f32.mrb[20].mxu1  ;;  %v983_v41 = vpop.f32.mrb[40].mxu0 }
 0x209   : > { %v1024_v42 = vadd.f32 %v1023_v40, %v649_v39  ;;  %v1025_v43 = vpop.f32.mrb[21].mxu1  ;;  %v984_v44 = vadd.f32 %v983_v41, %v599_v29  ;;  %v985_v45 = vpop.f32.mrb[41].mxu0 }
 0x20a   : > { %v1026_v46 = vpop.f32.mrb[22].mxu1  ;;  %v986_v47 = vpop.f32.mrb[42].mxu0 }
 0x20b   : > { %1121 = vst.msk [vmem:[%s1854_s20 + $0x50] sm:$0xff] %vm1110_vm4, %v1024_v42  ;;  %v1027_v48 = vadd.f32 %v1026_v46, %v654_v38  ;;  %v1028_v49 = vpop.f32.mrb[23].mxu1  ;;  %1111 = vst.msk [vmem:[%s1854_s20] sm:$0xff] %vm1110_vm4, %v984_v44  ;;  %v987_v50 = vadd.f32 %v986_v47, %v604_v31  ;;  %v988_v51 = vpop.f32.mrb[43].mxu0 }
 0x20c   : > { %v689_v31 = vpop.permute.xlu0 %688 }
 0x20d   : > { %1122 = vst.msk [vmem:[%s1854_s20 + $0x58] sm:$0xff] %vm1110_vm4, %v1027_v48  ;;  %1112 = vst.msk [vmem:[%s1854_s20 + $0x8] sm:$0xff] %vm1110_vm4, %v987_v50 }
 0x210   : > { %v1031_v54 = vpop.f32.mrb[24].mxu1  ;;  %v991_v55 = vpop.f32.mrb[44].mxu0 }
 0x211   : > { %v1032_v56 = vadd.f32 %v1031_v54, %v659_v53  ;;  %v1033_v57 = vpop.f32.mrb[25].mxu1  ;;  %v992_v58 = vadd.f32 %v991_v55, %v609_v28  ;;  %v993_v59 = vpop.f32.mrb[45].mxu0 }
 0x212   : > { %v1034_v60 = vpop.f32.mrb[26].mxu1  ;;  %v994_v61 = vpop.f32.mrb[46].mxu0 }
 0x213   : > { %1123 = vst.msk [vmem:[%s1854_s20 + $0x60] sm:$0xff] %vm1110_vm4, %v1032_v56  ;;  %v1035_v62 = vadd.f32 %v1034_v60, %v664_v52  ;;  %v1036_v63 = vpop.f32.mrb[27].mxu1  ;;  %1113 = vst.msk [vmem:[%s1854_s20 + $0x10] sm:$0xff] %vm1110_vm4, %v992_v58  ;;  %v995_v0 = vadd.f32 %v994_v61, %v614_v30  ;;  %v996_v15 = vpop.f32.mrb[47].mxu0 }
 0x214   : > { %v694_v30 = vpop.permute.xlu1 %693 }
 0x215   : > { %1124 = vst.msk [vmem:[%s1854_s20 + $0x68] sm:$0xff] %vm1110_vm4, %v1035_v62  ;;  %1114 = vst.msk [vmem:[%s1854_s20 + $0x18] sm:$0xff] %vm1110_vm4, %v995_v0 }
 0x218   : > { %v1039_v3 = vpop.f32.mrb[28].mxu1  ;;  %v999_v4 = vpop.f32.mrb[48].mxu0 }
 0x219   : > { %v1040_v5 = vadd.f32 %v1039_v3, %v669_v2  ;;  %v1041_v6 = vpop.f32.mrb[29].mxu1  ;;  %v1000_v7 = vadd.f32 %v999_v4, %v619_v34  ;;  %v1001_v8 = vpop.f32.mrb[49].mxu0 }
 0x21a   : > { %v1042_v9 = vpop.f32.mrb[30].mxu1  ;;  %v1002_v10 = vpop.f32.mrb[50].mxu0 }
 0x21b   : > { %1125 = vst.msk [vmem:[%s1854_s20 + $0x70] sm:$0xff] %vm1110_vm4, %v1040_v5  ;;  %v1043_v11 = vadd.f32 %v1042_v9, %v674_v1  ;;  %v1044_v12 = vpop.f32.mrb[31].mxu1  ;;  %1115 = vst.msk [vmem:[%s1854_s20 + $0x20] sm:$0xff] %vm1110_vm4, %v1000_v7  ;;  %v1003_v13 = vadd.f32 %v1002_v10, %v624_v33  ;;  %v1004_v14 = vpop.f32.mrb[51].mxu0 }
 0x21c   : > { %v704_v49 = vpop.permute.xlu1 %703 }
 0x21d   : > { %1126 = vst.msk [vmem:[%s1854_s20 + $0x78] sm:$0xff] %vm1110_vm4, %v1043_v11  ;;  %1116 = vst.msk [vmem:[%s1854_s20 + $0x28] sm:$0xff] %vm1110_vm4, %v1003_v13 }
 0x220   : > { %v1007_v18 = vpop.f32.mrb[52].mxu0  ;;  %v1047_v19 = vpop.f32.mrb[32].mxu1 }
 0x221   : > { %v1008_v20 = vadd.f32 %v1007_v18, %v1844_v36  ;;  %v1048_v21 = vadd.f32 %v1047_v19, %v679_v17  ;;  %v1009_v22 = vpop.f32.mrb[53].mxu0  ;;  %v1049_v23 = vpop.f32.mrb[33].mxu1 }
 0x222   : > { %v1010_v24 = vpop.f32.mrb[54].mxu0  ;;  %v1050_v25 = vpop.f32.mrb[34].mxu1 }
 0x223   : > { %1117 = vst.msk [vmem:[%s1854_s20 + $0x30] sm:$0xff] %vm1110_vm4, %v1008_v20  ;;  %1127 = vst.msk [vmem:[%s1854_s20 + $0x80] sm:$0xff] %vm1110_vm4, %v1048_v21  ;;  %v1011_v26 = vadd.f32 %v1010_v24, %v1842_v35  ;;  %v1051_v27 = vadd.f32 %v1050_v25, %v684_v16  ;;  %v1052_v28 = vpop.f32.mrb[35].mxu1  ;;  %v1012_v29 = vpop.f32.mrb[55].mxu0 }
 0x224   : > { %v714_v56 = vpop.permute.xlu1 %713 }
 0x225   : > { %1118 = vst.msk [vmem:[%s1854_s20 + $0x38] sm:$0xff] %vm1110_vm4, %v1011_v26  ;;  %1128 = vst.msk [vmem:[%s1854_s20 + $0x88] sm:$0xff] %vm1110_vm4, %v1051_v27 }
 0x228   : > { %v1015_v33 = vpop.f32.mrb[56].mxu0  ;;  %v1055_v34 = vpop.f32.mrb[36].mxu1 }
 0x229   : > { %v1016_v36 = vadd.f32 %v1015_v33, %v1848_v37  ;;  %v1056_v38 = vadd.f32 %v1055_v34, %v689_v31  ;;  %v1017_v39 = vpop.f32.mrb[57].mxu0  ;;  %v1057_v35 = vpop.f32.mrb[37].mxu1 }
 0x22a   : > { %v1018_v40 = vpop.f32.mrb[58].mxu0  ;;  %v1058_v41 = vpop.f32.mrb[38].mxu1 }
 0x22b   : > { %1119 = vst.msk [vmem:[%s1854_s20 + $0x40] sm:$0xff] %vm1110_vm4, %v1016_v36  ;;  %1129 = vst.msk [vmem:[%s1854_s20 + $0x90] sm:$0xff] %vm1110_vm4, %v1056_v38  ;;  %v1019_v42 = vadd.f32 %v1018_v40, %v1846_v32  ;;  %v1059_v43 = vadd.f32 %v1058_v41, %v694_v30  ;;  %v1060_v44 = vpop.f32.mrb[39].mxu1  ;;  %v1020_v45 = vpop.f32.mrb[59].mxu0 }
 0x22c   : > { %v699_v37 = vpop.permute.xlu0 %698  ;;  %v724_v0 = vpop.permute.xlu1 %723 }
 0x22d   : > { %1120 = vst.msk [vmem:[%s1854_s20 + $0x48] sm:$0xff] %vm1110_vm4, %v1019_v42  ;;  %1130 = vst.msk [vmem:[%s1854_s20 + $0x98] sm:$0xff] %vm1110_vm4, %v1059_v43 }
 0x230   : > { %v1063_v46 = vpop.f32.mrb[40].mxu1  ;;  %v709_v32 = vpop.permute.xlu0 %708 }
 0x231   : > { %v1064_v47 = vadd.f32 %v1063_v46, %v699_v37  ;;  %v1065_v48 = vpop.f32.mrb[41].mxu1  ;;  %v734_v7 = vpop.permute.xlu1 %733 }
 0x232   : > { %v1066_v50 = vpop.f32.mrb[42].mxu1 }
 0x233   : > { %1131 = vst.msk [vmem:[%s1854_s20 + $0xa0] sm:$0xff] %vm1110_vm4, %v1064_v47  ;;  %v1067_v51 = vadd.f32 %v1066_v50, %v704_v49  ;;  %v1068_v52 = vpop.f32.mrb[43].mxu1 }
 0x234   : > { %v719_v60 = vpop.permute.xlu0 %718 }
 0x235   : > { %1132 = vst.msk [vmem:[%s1854_s20 + $0xa8] sm:$0xff] %vm1110_vm4, %v1067_v51  ;;  %v744_v16 = vpop.permute.xlu1 %743 }
 0x238   : > { %v1071_v53 = vpop.f32.mrb[44].mxu1  ;;  %v729_v3 = vpop.permute.xlu0 %728 }
 0x239   : > { %v1072_v54 = vadd.f32 %v1071_v53, %v709_v32  ;;  %v1073_v55 = vpop.f32.mrb[45].mxu1  ;;  %v754_v24 = vpop.permute.xlu1 %753 }
 0x23a   : > { %v1074_v57 = vpop.f32.mrb[46].mxu1 }
 0x23b   : > { %1133 = vst.msk [vmem:[%s1854_s20 + $0xb0] sm:$0xff] %vm1110_vm4, %v1072_v54  ;;  %v1075_v58 = vadd.f32 %v1074_v57, %v714_v56  ;;  %v1076_v59 = vpop.f32.mrb[47].mxu1 }
 0x23c   : > { %v739_v11 = vpop.permute.xlu0 %738 }
 0x23d   : > { %1134 = vst.msk [vmem:[%s1854_s20 + $0xb8] sm:$0xff] %vm1110_vm4, %v1075_v58 }
 0x240   : > { %v1079_v61 = vpop.f32.mrb[48].mxu1  ;;  %v749_v20 = vpop.permute.xlu0 %748 }
 0x241   : > { %v1080_v62 = vadd.f32 %v1079_v61, %v719_v60  ;;  %v1081_v63 = vpop.f32.mrb[49].mxu1 }
 0x242   : > { %v1082_v15 = vpop.f32.mrb[50].mxu1 }
 0x243   : > { %1135 = vst.msk [vmem:[%s1854_s20 + $0xc0] sm:$0xff] %vm1110_vm4, %v1080_v62  ;;  %v1083_v1 = vadd.f32 %v1082_v15, %v724_v0  ;;  %v1084_v2 = vpop.f32.mrb[51].mxu1 }
 0x245   : > { %1136 = vst.msk [vmem:[%s1854_s20 + $0xc8] sm:$0xff] %vm1110_vm4, %v1083_v1 }
 0x248   : > { %v1087_v4 = vpop.f32.mrb[52].mxu1 }
 0x249   : > { %v1088_v5 = vadd.f32 %v1087_v4, %v729_v3  ;;  %v1089_v6 = vpop.f32.mrb[53].mxu1 }
 0x24a   : > { %v1090_v8 = vpop.f32.mrb[54].mxu1 }
 0x24b   : > { %1137 = vst.msk [vmem:[%s1854_s20 + $0xd0] sm:$0xff] %vm1110_vm4, %v1088_v5  ;;  %v1091_v9 = vadd.f32 %v1090_v8, %v734_v7  ;;  %v1092_v10 = vpop.f32.mrb[55].mxu1 }
 0x24d   : > { %1138 = vst.msk [vmem:[%s1854_s20 + $0xd8] sm:$0xff] %vm1110_vm4, %v1091_v9 }
 0x250   : > { %v1095_v12 = vpop.f32.mrb[56].mxu1 }
 0x251   : > { %v1096_v13 = vadd.f32 %v1095_v12, %v739_v11  ;;  %v1097_v14 = vpop.f32.mrb[57].mxu1 }
 0x252   : > { %v1098_v17 = vpop.f32.mrb[58].mxu1 }
 0x253   : > { %1139 = vst.msk [vmem:[%s1854_s20 + $0xe0] sm:$0xff] %vm1110_vm4, %v1096_v13  ;;  %v1099_v18 = vadd.f32 %v1098_v17, %v744_v16  ;;  %v1100_v19 = vpop.f32.mrb[59].mxu1 }
 0x255   : > { %1140 = vst.msk [vmem:[%s1854_s20 + $0xe8] sm:$0xff] %vm1110_vm4, %v1099_v18 }
 0x258   : > { %v1103_v21 = vpop.f32.mrb[60].mxu1 }
 0x259   : > { %v1104_v22 = vadd.f32 %v1103_v21, %v749_v20  ;;  %v1105_v23 = vpop.f32.mrb[61].mxu1 }
 0x25a   : > { %v1106_v25 = vpop.f32.mrb[62].mxu1 }
 0x25b   : > { %1141 = vst.msk [vmem:[%s1854_s20 + $0xf0] sm:$0xff] %vm1110_vm4, %v1104_v22  ;;  %v1107_v26 = vadd.f32 %v1106_v25, %v754_v24  ;;  %v1108_v27 = vpop.f32.mrb[63].mxu1 }
 0x25d   : > { %1142 = vst.msk [vmem:[%s1854_s20 + $0xf8] sm:$0xff] %vm1110_vm4, %v1107_v26 }
 0x25e PF: > { %s14_s15 = sadd.s32 1, %s1491_s15  }
 0x25f   : > { %p11_p4 = scmp.ge.s32.totalorder %s14_s15, 4  }
 0x261   :  { %13 = sbr.rel (!%p11_p4) target bundleno = 1 (0x1), region = 68 }

</bundles_post_ra>
